<compile_context>
chip_gen: v7x
topology: tpu7x:2x2x1
jax: 0.10.0
libtpu: 0.0.40
codegen_flags: <defaults>
</compile_context>

<pallas_src>
import functools

import jax
import jax.numpy as jnp
from jax.experimental import pallas as pl
from jax.experimental.pallas import tpu as pltpu


def _round_up(x, m):
    return (x + m - 1) // m * m


def _cdiv(a, b):
    return (a + b - 1) // b


def _choose_batch_tile(B, block_b, align):
    """Pick the batch tile: big (pipeline efficiency) but >=2 grid tiles when
    B allows, so ("parallel",) actually shards across both v7x TensorCores."""
    tb = _round_up(min(block_b, _round_up(B, align)), align)
    if B > align and _cdiv(B, tb) < 2:
        tb = _round_up(_cdiv(B, 2), align)
    return tb


def _linear_gate_kernel(x_ref, h_ref, wx_ref, wh_ref, b_ref, out_ref, *, num_hidden):
    # Shapes (static at trace time):
    #   x   : (tb, Dxp)  bf16 activation tile, input_dim zero-padded to Dxp
    #   h   : (tb, Dh)   h_t tile in its input dtype (Dh == num_hidden)
    #   wx  : (Dxp, Np)  packed Linear_x weight (bf16), cols [0:2H] valid
    #   wh  : (Dh,  Np)  packed Linear_h weight (bf16)
    #   b   : (1,   Np)  f32 packed bias (bx+bh, forget bias folded into z half)
    #   out : (tb, H)
    H = num_hidden
    h_f32 = h_ref[...].astype(jnp.float32)           # residual operand (full precision)

    # Two MXU dots (bf16 operands, f32 accumulation) summed into one result.
    acc = jnp.dot(x_ref[...], wx_ref[...], preferred_element_type=jnp.float32)
    acc = acc + jnp.dot(h_ref[...].astype(wh_ref.dtype), wh_ref[...],
                        preferred_element_type=jnp.float32)
    acc = acc + b_ref[...]

    z = jax.nn.sigmoid(acc[:, :H])
    n = jnp.maximum(acc[:, H:2 * H], 0.0)
    out_ref[...] = ((1.0 - z) * n + z * h_f32).astype(out_ref.dtype)


def prepack_linear_gate_params(wx, bx, wh, bh, *, forget_bias=1.0,
                               compute_dtype=jnp.bfloat16):
    """Pack weights/bias once. Call this OUTSIDE any RNN step/scan and reuse
    the result with linear_gate_prepacked() every step (amortizes packing)."""
    Dx, H2 = wx.shape
    H = H2 // 2
    Dh = wh.shape[0]
    assert wh.shape == (Dh, H2) and bx.shape == (H2,) and bh.shape == (H2,)

    Np = _round_up(2 * H, 128)        # lane-dense packed gate width (z | n adjacent)
    Dxp = _round_up(Dx, 128)          # MXU-aligned contraction depth for the x dot

    wxp = jnp.zeros((Dxp, Np), compute_dtype).at[:Dx, :2 * H].set(
        wx.astype(compute_dtype))
    whp = jnp.zeros((Dh, Np), compute_dtype).at[:, :2 * H].set(
        wh.astype(compute_dtype))

    bias = jnp.zeros((1, Np), jnp.float32)
    bias = bias.at[0, :H].set(bx[:H].astype(jnp.float32)
                              + bh[:H].astype(jnp.float32) + forget_bias)
    bias = bias.at[0, H:2 * H].set(bx[H:].astype(jnp.float32)
                                   + bh[H:].astype(jnp.float32))
    return wxp, whp, bias


def linear_gate_prepacked(x_t, h_t, packed, *, block_b=512):
    """Forward pass with prepacked params (wxp, whp, bias)."""
    wxp, whp, bias = packed
    squeeze = x_t.ndim == 1
    if squeeze:
        x_t, h_t = x_t[None], h_t[None]

    B, Dx = x_t.shape
    Dh = h_t.shape[1]
    Dxp, Np = wxp.shape
    H = Dh                                    # residual blend requires rule_dim == num_hidden
    assert whp.shape == (Dh, Np) and bias.shape == (1, Np)
    assert Dx <= Dxp and 2 * H <= Np, "packed params do not match activations"

    compute_dtype = wxp.dtype
    out_dtype = h_t.dtype

    # bf16 activations pack 16 rows per sublane; keep the batch tile aligned.
    align = max(8, 32 // jnp.dtype(compute_dtype).itemsize)
    tb = _choose_batch_tile(B, block_b, align)
    num_tiles = _cdiv(B, tb)
    Bp = num_tiles * tb

    # Activation staging: x is cast to the MXU dtype (halves its HBM traffic)
    # and zero-padded in batch/contraction; h keeps its dtype, batch-pad only.
    xp = jnp.pad(x_t.astype(compute_dtype), ((0, Bp - B), (0, Dxp - Dx)))
    hp = jnp.pad(h_t, ((0, Bp - B), (0, 0)))

    resident = int(wxp.size) * jnp.dtype(wxp.dtype).itemsize \
        + int(whp.size) * jnp.dtype(whp.dtype).itemsize \
        + int(bias.size) * 4
    tile_bytes = tb * Dxp * jnp.dtype(compute_dtype).itemsize \
        + tb * Dh * jnp.dtype(hp.dtype).itemsize \
        + tb * H * jnp.dtype(out_dtype).itemsize
    # Double-buffered tiles + (conservatively double-buffered) resident weights
    # + headroom; explicit so v5e's 16 MiB default scoped VMEM is not a limiter
    # and v7x's 64 MiB physical budget is respected by construction.
    vmem_limit = int(min(2 * (tile_bytes + resident) + (8 << 20), 96 << 20))

    out_bytes = Bp * H * jnp.dtype(out_dtype).itemsize
    in_bytes = Bp * Dxp * jnp.dtype(compute_dtype).itemsize \
        + Bp * Dh * jnp.dtype(hp.dtype).itemsize + resident
    cost = pl.CostEstimate(
        flops=2 * Bp * (Dxp + Dh) * Np + 8 * Bp * H,
        transcendentals=Bp * H,
        bytes_accessed=in_bytes + out_bytes,
    )

    kernel = functools.partial(_linear_gate_kernel, num_hidden=H)
    out = pl.pallas_call(
        kernel,
        out_shape=jax.ShapeDtypeStruct((Bp, H), out_dtype),
        grid=(num_tiles,),
        in_specs=[
            pl.BlockSpec((tb, Dxp), lambda i: (i, 0)),    # x tile (pipelined)
            pl.BlockSpec((tb, Dh), lambda i: (i, 0)),     # h tile (pipelined)
            pl.BlockSpec((Dxp, Np), lambda i: (0, 0)),    # wx packed (grid-invariant)
            pl.BlockSpec((Dh, Np), lambda i: (0, 0)),     # wh packed (grid-invariant)
            pl.BlockSpec((1, Np), lambda i: (0, 0)),      # bias (grid-invariant)
        ],
        out_specs=pl.BlockSpec((tb, H), lambda i: (i, 0)),
        compiler_params=pltpu.CompilerParams(
            dimension_semantics=("parallel",),
            vmem_limit_bytes=vmem_limit),
        cost_estimate=cost,
    )(xp, hp, wxp, whp, bias)

    out = out[:B]
    if squeeze:
        out = out[0]
    return out


def linear_gate(x_t, h_t, wx, bx, wh, bh, *, forget_bias=1.0, block_b=512,
                compute_dtype=jnp.bfloat16):
    """Convenience wrapper: packs per call. For recurrent use, prepack once."""
    H = wx.shape[1] // 2
    assert h_t.shape[-1] == H, \
        "residual blend (1 - z) * n + z * h requires rule_dim == num_hidden"
    packed = prepack_linear_gate_params(wx, bx, wh, bh, forget_bias=forget_bias,
                                        compute_dtype=compute_dtype)
    return linear_gate_prepacked(x_t, h_t, packed, block_b=block_b)


def _reference_forward(x_t, h_t, wx, bx, wh, bh, forget_bias=1.0,
                       compute_dtype=jnp.float32):
    """Pure-JAX reference matching the PyTorch module. compute_dtype=bfloat16
    mirrors the kernel's deliberate bf16-operand / f32-accumulate numerics."""
    H = wx.shape[1] // 2
    full_f32 = jnp.dtype(compute_dtype) == jnp.dtype(jnp.float32)
    prec = jax.lax.Precision.HIGHEST if full_f32 else None
    xc = jnp.dot(x_t.astype(compute_dtype), wx.astype(compute_dtype),
                 precision=prec, preferred_element_type=jnp.float32) \
        + bx.astype(jnp.float32)
    hc = jnp.dot(h_t.astype(compute_dtype), wh.astype(compute_dtype),
                 precision=prec, preferred_element_type=jnp.float32) \
        + bh.astype(jnp.float32)
    z = jax.nn.sigmoid(xc[..., :H] + hc[..., :H] + forget_bias)
    n = jnp.maximum(xc[..., H:] + hc[..., H:], 0.0)
    return (1.0 - z) * n + z * h_t.astype(jnp.float32)


if __name__ == "__main__":
    # Small, deterministic configuration.
    B = 48
    input_dim = 48
    rule_dim = 32           # must equal num_hidden for the residual blend
    num_hidden = 32

    key = jax.random.PRNGKey(0)
    k = jax.random.split(key, 6)
    x_t = jax.random.normal(k[0], (B, input_dim), jnp.float32)
    h_t = jax.random.normal(k[1], (B, rule_dim), jnp.float32)
    scale = 0.1
    wx = scale * jax.random.normal(k[2], (input_dim, 2 * num_hidden), jnp.float32)
    bx = scale * jax.random.normal(k[3], (2 * num_hidden,), jnp.float32)
    wh = scale * jax.random.normal(k[4], (rule_dim, 2 * num_hidden), jnp.float32)
    bh = scale * jax.random.normal(k[5], (2 * num_hidden,), jnp.float32)

    # Pack once (hoisted out of the per-step path), run the tiled kernel.
    packed = prepack_linear_gate_params(wx, bx, wh, bh, forget_bias=1.0)
    fwd = jax.jit(functools.partial(linear_gate_prepacked, block_b=512))
    out = jax.block_until_ready(fwd(x_t, h_t, packed))
    assert out.shape == (B, num_hidden), out.shape

    # Tight check vs. a reference using the same bf16-operand / f32-accum numerics.
    ref_bf16 = _reference_forward(x_t, h_t, wx, bx, wh, bh,
                                  compute_dtype=jnp.bfloat16)
    assert jnp.allclose(out, ref_bf16, atol=1e-3, rtol=1e-3), \
        float(jnp.max(jnp.abs(out - ref_bf16)))

    # Looser check vs. the full-f32 reference (documents the deliberate bf16 cast).
    ref_f32 = _reference_forward(x_t, h_t, wx, bx, wh, bh,
                                 compute_dtype=jnp.float32)
    assert jnp.allclose(out, ref_f32, atol=3e-2, rtol=3e-2), \
        float(jnp.max(jnp.abs(out - ref_f32)))

    # Unbatched path via the convenience wrapper: matches torch.split(..., dim=0)
    # on 1-D inputs exactly.
    out1 = jax.block_until_ready(linear_gate(x_t[0], h_t[0], wx, bx, wh, bh))
    assert out1.shape == (num_hidden,), out1.shape
    assert jnp.allclose(out1, ref_bf16[0], atol=1e-3, rtol=1e-3), \
        float(jnp.max(jnp.abs(out1 - ref_bf16[0])))

    print("KERNEL_OK")
</pallas_src>

<mosaic_0001>
module attributes {stable_mosaic.version = 11 : i64} {
  func.func @_linear_gate_kernel(%arg0: i32, %arg1: memref<32x128xbf16, #tpu.memory_space<vmem>>, %arg2: memref<32x32xf32, #tpu.memory_space<vmem>>, %arg3: memref<128x128xbf16, #tpu.memory_space<vmem>>, %arg4: memref<32x128xbf16, #tpu.memory_space<vmem>>, %arg5: memref<1x128xf32, #tpu.memory_space<vmem>>, %arg6: memref<32x32xf32, #tpu.memory_space<vmem>>) attributes {dimension_semantics = [#tpu.dimension_semantics<parallel>], iteration_bounds = array<i64: 2>, scalar_prefetch = 0 : i64, scratch_operands = 0 : i64, tpu.core_type = #tpu.core_type<tc>, window_params = [{transform_indices = @transform_0, window_bounds = array<i64: 32, 128>}, {transform_indices = @transform_1, window_bounds = array<i64: 32, 32>}, {pipeline_mode = #tpu.pipeline_mode<synchronous>, transform_indices = @transform_2, window_bounds = array<i64: 128, 128>}, {pipeline_mode = #tpu.pipeline_mode<synchronous>, transform_indices = @transform_3, window_bounds = array<i64: 32, 128>}, {pipeline_mode = #tpu.pipeline_mode<synchronous>, transform_indices = @transform_4, window_bounds = array<i64: 1, 128>}, {transform_indices = @transform_5, window_bounds = array<i64: 32, 32>}]} {
    %c0 = arith.constant 0 : index
    %c0_0 = arith.constant 0 : index
    %0 = vector.load %arg2[%c0, %c0_0] : memref<32x32xf32, #tpu.memory_space<vmem>>, vector<32x32xf32>
    %c0_1 = arith.constant 0 : index
    %c0_2 = arith.constant 0 : index
    %1 = vector.load %arg1[%c0_1, %c0_2] : memref<32x128xbf16, #tpu.memory_space<vmem>>, vector<32x128xbf16>
    %c0_3 = arith.constant 0 : index
    %c0_4 = arith.constant 0 : index
    %2 = vector.load %arg3[%c0_3, %c0_4] : memref<128x128xbf16, #tpu.memory_space<vmem>>, vector<128x128xbf16>
    %cst = arith.constant dense<0.000000e+00> : vector<32x128xf32>
    %3 = tpu.matmul %1, %2, %cst {dimension_numbers = #tpu.dot_dimension_numbers<[1], [0], [0], [1], [0, 0, 1, 1], [], []>} : vector<32x128xbf16>, vector<128x128xbf16>, vector<32x128xf32> -> vector<32x128xf32>
    %c0_5 = arith.constant 0 : index
    %c0_6 = arith.constant 0 : index
    %4 = vector.load %arg2[%c0_5, %c0_6] : memref<32x32xf32, #tpu.memory_space<vmem>>, vector<32x32xf32>
    %5 = arith.truncf %4 : vector<32x32xf32> to vector<32x32xbf16>
    %c0_7 = arith.constant 0 : index
    %c0_8 = arith.constant 0 : index
    %6 = vector.load %arg4[%c0_7, %c0_8] : memref<32x128xbf16, #tpu.memory_space<vmem>>, vector<32x128xbf16>
    %cst_9 = arith.constant dense<0.000000e+00> : vector<32x128xf32>
    %7 = tpu.matmul %5, %6, %cst_9 {dimension_numbers = #tpu.dot_dimension_numbers<[1], [0], [0], [1], [0, 0, 1, 1], [], []>} : vector<32x32xbf16>, vector<32x128xbf16>, vector<32x128xf32> -> vector<32x128xf32>
    %8 = arith.addf %3, %7 : vector<32x128xf32>
    %c0_10 = arith.constant 0 : index
    %c0_11 = arith.constant 0 : index
    %9 = vector.load %arg5[%c0_10, %c0_11] : memref<1x128xf32, #tpu.memory_space<vmem>>, vector<1x128xf32>
    %10 = vector.broadcast %9 : vector<1x128xf32> to vector<32x128xf32>
    %11 = arith.addf %8, %10 : vector<32x128xf32>
    %12 = vector.extract_strided_slice %11 {offsets = [0, 0], sizes = [32, 32], strides = [1, 1]} : vector<32x128xf32> to vector<32x32xf32>
    %13 = arith.negf %12 : vector<32x32xf32>
    %14 = math.exp %13 : vector<32x32xf32>
    %cst_12 = arith.constant 1.000000e+00 : f32
    %15 = vector.broadcast %cst_12 : f32 to vector<32x32xf32>
    %16 = arith.addf %15, %14 : vector<32x32xf32>
    %17 = arith.divf %15, %16 : vector<32x32xf32>
    %18 = vector.extract_strided_slice %11 {offsets = [0, 32], sizes = [32, 32], strides = [1, 1]} : vector<32x128xf32> to vector<32x32xf32>
    %cst_13 = arith.constant 0.000000e+00 : f32
    %19 = vector.broadcast %cst_13 : f32 to vector<32x32xf32>
    %20 = arith.maximumf %18, %19 : vector<32x32xf32>
    %cst_14 = arith.constant 1.000000e+00 : f32
    %21 = vector.broadcast %cst_14 : f32 to vector<32x32xf32>
    %22 = arith.subf %21, %17 : vector<32x32xf32>
    %23 = arith.mulf %22, %20 : vector<32x32xf32>
    %24 = arith.mulf %17, %0 : vector<32x32xf32>
    %25 = arith.addf %23, %24 : vector<32x32xf32>
    %c0_15 = arith.constant 0 : index
    %c0_16 = arith.constant 0 : index
    %26 = vector.load %arg6[%c0_15, %c0_16] : memref<32x32xf32, #tpu.memory_space<vmem>>, vector<32x32xf32>
    tpu.vector_store %arg6[%c0_15, %c0_16], %25 {strides = array<i32>} : memref<32x32xf32, #tpu.memory_space<vmem>>, vector<32x32xf32>,
    return
  }
  func.func @transform_0(%arg0: i32) -> (i32, i32) {
    %c0_i32 = arith.constant 0 : i32
    %c0_i32_0 = arith.constant 0 : i32
    return %arg0, %c0_i32 : i32, i32
  }
  func.func @transform_1(%arg0: i32) -> (i32, i32) {
    %c0_i32 = arith.constant 0 : i32
    %c0_i32_0 = arith.constant 0 : i32
    return %arg0, %c0_i32 : i32, i32
  }
  func.func @transform_2(%arg0: i32) -> (i32, i32) {
    %c0_i32 = arith.constant 0 : i32
    %c0_i32_0 = arith.constant 0 : i32
    %c0_i32_1 = arith.constant 0 : i32
    return %c0_i32, %c0_i32_0 : i32, i32
  }
  func.func @transform_3(%arg0: i32) -> (i32, i32) {
    %c0_i32 = arith.constant 0 : i32
    %c0_i32_0 = arith.constant 0 : i32
    %c0_i32_1 = arith.constant 0 : i32
    return %c0_i32, %c0_i32_0 : i32, i32
  }
  func.func @transform_4(%arg0: i32) -> (i32, i32) {
    %c0_i32 = arith.constant 0 : i32
    %c0_i32_0 = arith.constant 0 : i32
    %c0_i32_1 = arith.constant 0 : i32
    return %c0_i32, %c0_i32_0 : i32, i32
  }
  func.func @transform_5(%arg0: i32) -> (i32, i32) {
    %c0_i32 = arith.constant 0 : i32
    %c0_i32_0 = arith.constant 0 : i32
    return %arg0, %c0_i32 : i32, i32
  }
}

</mosaic_0001>

<bundles_post_ra>
// kernel: linear_gate_prepacked.1
= control target key start
LH: loop header
LB: loop body
LE: loop exit
PB: predicated region body
PF: predicated region fallthrough
CT: control target
= control target key end

     0   :  { %s755_s18 = smov 0   ;;  %s838_s0 = inlined_call_operand.vmem [shape: bf16[64,128], index: 0, kind: input, shape index: {}]   ;;  %s839_s1 = inlined_call_operand.vmem [shape: f32[64,32], index: 1, kind: input, shape index: {}]   ;;  %s840_s2 = inlined_call_operand.vmem [shape: bf16[128,128], index: 2, kind: input, shape index: {}]   ;;  %s841_s3 = inlined_call_operand.vmem [shape: bf16[32,128], index: 3, kind: input, shape index: {}]   ;;  %s842_s4 = inlined_call_operand.vmem [shape: f32[1,128], index: 4, kind: input, shape index: {}]   ;;  %s843_s5 = inlined_call_operand.vmem [shape: f32[64,32], index: 5, kind: output, shape index: {}]  }
   0x1 LB: > { %s601_s19 = sadd.s32 4294967295, %s722_s18   ;;  %p605_p0 = scmp.ge.s32.totalorder %s722_s18, 1  ;;  %s722_s18 = sphi %s755_s18, %s15_s18  }
   0x2   : > { %p199_p1 = scmp.lt.s32.totalorder %s722_s18, 3 }
   0x4   : > { %p200_p2 = pnand %p605_p0, %p199_p1 }
   0x5   : > { %v688_v0 = vld [vmem:[%s840_s2] sm:$0xff] (!%p200_p2)   ;;  %s606_s22 = sshll.u32 (!%p200_p2), %s601_s19, 2  ;;  %v689_v1 = vld [vmem:[%s840_s2 + $0x8] sm:$0xff] (!%p200_p2)   ;;  %v690_v2 = vld [vmem:[%s840_s2 + $0x10] sm:$0xff] (!%p200_p2)   ;;  %vm293_vm0 = vcmask (!%p200_p2), 261120   ;;  %s724_s29 = smov (!%p200_p2), 96  }
   0x6   : > { %203 = sbr.rel (%p200_p2) target bundleno = 381 (0x17d), region = 40  ;;  %p233_p3 = scmp.lt.s32.totalorder (!%p200_p2), %s606_s22, 7  ;;  %655 = vmatprep.subr.bf16.mxu0 (!%p200_p2), %v688_v0  ;;  %v694_v3 = vld [vmem:[%s841_s3] sm:$0xff] (!%p200_p2)   ;;  %v691_v4 = vld [vmem:[%s840_s2 + $0x18] sm:$0xff] (!%p200_p2)   ;;  %v696_v5 = vld [vmem:[%s841_s3 + $0x8] sm:$0xff] (!%p200_p2)  }
   0x7   : > { %656 = vmatpush3.bf16.msra.mxu0 (!%p200_p2), %v688_v0  ;;  %647 = vmatprep.subr.bf16.mxu1 (!%p200_p2), %v694_v3  ;;  %v692_v8 = vld [vmem:[%s840_s2 + $0x20] sm:$0xff] (!%p200_p2)   ;;  %v693_v14 = vld [vmem:[%s840_s2 + $0x28] sm:$0xff] (!%p200_p2)   ;;  %v695_v15 = vld [vmem:[%s840_s2 + $0x30] sm:$0xff] (!%p200_p2)  }
   0x8   : > { %657 = vmatprep.subr.bf16.mxu0 (!%p200_p2), %v689_v1  ;;  %648 = vmatpush3.bf16.msra.mxu1 (!%p200_p2), %v694_v3  ;;  %v697_v16 = vld [vmem:[%s840_s2 + $0x38] sm:$0xff] (!%p200_p2)   ;;  %v626_v23 = vld [vmem:[%s842_s4] ss:$0 sm:$0xff] (!%p200_p2) }
   0x9   : > { %649 = vmatprep.subr.bf16.mxu1 (!%p200_p2), %v696_v5 }
   0xb   : > { %658 = vmatpush3.bf16.msra.mxu0 (!%p200_p2), %v689_v1 }
   0xc   : > { %659 = vmatprep.subr.bf16.mxu0 (!%p200_p2), %v690_v2  ;;  %650 = vmatpush3.bf16.msra.mxu1 (!%p200_p2), %v696_v5 }
   0xd   : > { %s845_s22 = smov (!%p233_p3, %s606_s22), 7 }
   0xe   : > { %s609_s27 = sshll.u32 %s845_s22, 3  ;;  %s607_s10 = sshll.u32 %s845_s22, 2 }
   0xf   : > { %s242_s7 = scalar_lea.vmem %s839_s1, %s609_s27  ;;  %s236_s15 = scalar_lea.vmem %s838_s0, %s607_s10  ;;  %660 = vmatpush3.bf16.msra.mxu0 %v690_v2 }
  0x10   : > { %v790_v6 = vld [vmem:[%s242_s7] sm:$0xff]  ;;  %v792_v7 = vld [vmem:[%s242_s7 + $0x8] sm:$0xff]  ;;  %v802_v10 = vld [vmem:[%s242_s7 + $0x10] sm:$0xff]  ;;  %661 = vmatprep.subr.bf16.mxu0 %v691_v4 }
  0x11   : > { %v275_v9 = vpack.c.bf16 %v792_v7, %v790_v6  ;;  %v804_v11 = vld [vmem:[%s242_s7 + $0x18] sm:$0xff]  ;;  %v698_v13 = vld [vmem:[%s236_s15] sm:$0xff]   ;;  %v699_v17 = vld [vmem:[%s236_s15 + $0x8] sm:$0xff]   ;;  %s248_s7 = scalar_lea.vmem %s843_s5, %s609_s27 }
  0x12   : > { %v276_v12 = vpack.c.bf16 %v804_v11, %v802_v10  ;;  %671 = vmatprep.mubr.bf16.mxu0 %v698_v13 }
  0x13   : > { %651 = vmatprep.mubr.msk.bf16.mxu1 %vm293_vm0, %v275_v9  ;;  %662 = vmatpush3.bf16.msra.mxu0 %v691_v4 }
  0x14   : > { %663 = vmatprep.subr.bf16.mxu0 %v692_v8  ;;  %652 = vmatmul.mubr.msk.bf16.vlgmr.msra.gmra.mrb[0].mxu1 %vm293_vm0, %v276_v12 }
  0x17   : > { %664 = vmatpush3.bf16.msra.mxu0 %v692_v8 }
  0x18   : > { %665 = vmatprep.subr.bf16.mxu0 %v693_v14 }
  0x1b   : > { %666 = vmatpush3.bf16.msra.mxu0 %v693_v14 }
  0x1c   : > { %667 = vmatprep.subr.bf16.mxu0 %v695_v15 }
  0x1f   : > { %668 = vmatpush3.bf16.msra.mxu0 %v695_v15 }
  0x20   : > { %669 = vmatprep.subr.bf16.mxu0 %v697_v16 }
  0x23   : > { %670 = vmatpush3.bf16.msra.mxu0 %v697_v16 }
  0x26   : > { %672 = vmatmul.mubr.bf16.vlgmr.msra.gmra.mrb[0].mxu0 %v699_v17 }
  0xe7   : > { %v653_v18 = vpop.f32.mrb[0].mxu1 }
  0xe8   : > { %v334_v19 = vpop.f32.mrb[1].mxu1 }
  0xe9   : > { %v654_v20 = vpop.f32.mrb[2].mxu1 }
  0xea   : > { %v337_v21 = vpop.f32.mrb[3].mxu1 }
  0xf9   : > { %v673_v22 = vpop.f32.mrb[0].mxu0 }
  0xfa   : > { %v452_v24 = vadd.f32 %v673_v22, %v653_v18  ;;  %v443_v25 = vpop.f32.mrb[1].mxu0 }
  0xfb   : > { %v444_v26 = vadd.f32 %v443_v25, %v334_v19  ;;  %v674_v27 = vpop.f32.mrb[2].mxu0 }
  0xfc   : > { %v467_v28 = vadd.f32 %v626_v23, %v452_v24  ;;  %v455_v29 = vadd.f32 %v674_v27, %v654_v20  ;;  %v446_v30 = vpop.f32.mrb[3].mxu0 }
  0xfd   : > { %v465_v31 = vadd.f32 %v626_v23, %v444_v26  ;;  %v447_v32 = vadd.f32 %v446_v30, %v337_v21 }
  0xfe   : > { %v468_v33 = vadd.f32 %v626_v23, %v455_v29  ;;  %v495_v34 = vmax.f32 %v467_v28, 0.0  ;;  %v629_v40 = vmul.f32 -1.442695, %v467_v28 }
  0xff   : > { %v466_v35 = vadd.f32 %v626_v23, %v447_v32  ;;  %v493_v36 = vmax.f32 %v465_v31, 0.0  ;;  %v627_v39 = vmul.f32 -1.442695, %v465_v31 }
 0x100   : > { %509 = vrot.lane.b32.xlu1 %v495_v34, %s724_s29  ;;  %v496_v37 = vmax.f32 %v468_v33, 0.0  ;;  %v630_v41 = vmul.f32 -1.442695, %v468_v33 }
 0x101   : > { %505 = vrot.lane.b32.xlu0 %v493_v36, %s724_s29  ;;  %v494_v38 = vmax.f32 %v466_v35, 0.0  ;;  %700 = vpow2.f32 %v627_v39  ;;  %v628_v42 = vmul.f32 -1.442695, %v466_v35 }
 0x102   : > { %702 = vpow2.f32 %v629_v40 }
 0x103   : > { %704 = vpow2.f32 %v630_v41 }
 0x104   : > { %511 = vrot.lane.b32.xlu1 %v496_v37, %s724_s29  ;;  %706 = vpow2.f32 %v628_v42 }
 0x105   : > { %507 = vrot.lane.b32.xlu0 %v494_v38, %s724_s29 }
 0x10b   : > { %v701_v43 = vpop.eup %700 }
 0x10c   : > { %v703_v44 = vpop.eup %702  ;;  %v481_v46 = vadd.f32 1.0, %v701_v43 }
 0x10d   : > { %v705_v45 = vpop.eup %704  ;;  %v483_v48 = vadd.f32 1.0, %v703_v44 }
 0x10e   : > { %v707_v47 = vpop.eup %706  ;;  %v484_v49 = vadd.f32 1.0, %v705_v45  ;;  %708 = vrcp.f32 %v481_v46 }
 0x10f   : > { %v482_v50 = vadd.f32 1.0, %v707_v47  ;;  %710 = vrcp.f32 %v483_v48 }
 0x110   : > { %712 = vrcp.f32 %v484_v49 }
 0x111   : > { %714 = vrcp.f32 %v482_v50 }
 0x118   : > { %v709_v51 = vpop.eup %708 }
 0x119   : > { %v711_v52 = vpop.eup %710  ;;  %v497_v55 = vsub.f32 1.0, %v709_v51  ;;  %v521_v59 = vmul.f32 %v709_v51, %v790_v6 }
 0x11a   : > { %v713_v53 = vpop.eup %712  ;;  %v499_v60 = vsub.f32 1.0, %v711_v52  ;;  %v523_v6 = vmul.f32 %v711_v52, %v802_v10 }
 0x11b   : > { %v715_v56 = vpop.eup %714  ;;  %v500_v63 = vsub.f32 1.0, %v713_v53  ;;  %v524_v8 = vmul.f32 %v713_v53, %v804_v11 }
 0x11c   : > { %v498_v0 = vsub.f32 1.0, %v715_v56  ;;  %v522_v4 = vmul.f32 %v715_v56, %v792_v7 }
 0x172   : > { %v510_v54 = vpop.permute.xlu1 %509 }
 0x173   : > { %v506_v57 = vpop.permute.xlu0 %505  ;;  %v519_v1 = vmul.f32 %v510_v54, %v499_v60 }
 0x174   : > { %v517_v58 = vmul.f32 %v506_v57, %v497_v55 }
 0x175   : > { %v527_v12 = vadd.f32 %v523_v6, %v519_v1 }
 0x176   : > { %v525_v61 = vadd.f32 %v521_v59, %v517_v58  ;;  %v512_v62 = vpop.permute.xlu1 %511 }
 0x177   : > { %v508_v2 = vpop.permute.xlu0 %507  ;;  %v520_v3 = vmul.f32 %v512_v62, %v500_v63  ;;  %531 = vst.msk [vmem:[%s248_s7 + $0x10] sm:$0xff] %vm293_vm0, %v527_v12 }
 0x178   : > { %529 = vst.msk [vmem:[%s248_s7] sm:$0xff] %vm293_vm0, %v525_v61  ;;  %v518_v5 = vmul.f32 %v508_v2, %v498_v0 }
 0x179   : > { %v528_v13 = vadd.f32 %v524_v8, %v520_v3 }
 0x17a   : > { %v526_v9 = vadd.f32 %v522_v4, %v518_v5 }
 0x17b   : > { %532 = vst.msk [vmem:[%s248_s7 + $0x18] sm:$0xff] %vm293_vm0, %v528_v13 }
 0x17c   : > { %530 = vst.msk [vmem:[%s248_s7 + $0x8] sm:$0xff] %vm293_vm0, %v526_v9 }
 0x17d PF: > { %s15_s18 = sadd.s32 1, %s722_s18  }
 0x17e   : > { %p12_p4 = scmp.ge.s32.totalorder %s15_s18, 4  }
 0x180   :  { %14 = sbr.rel (!%p12_p4) target bundleno = 1 (0x1), region = 73 }

</bundles_post_ra>
